<compile_context>
chip_gen: v5e
topology: v5e:2x2
jax: 0.10.0
libtpu: 0.0.40
codegen_flags: <defaults>
</compile_context>

<pallas_src>
import functools

import jax
import jax.numpy as jnp
from jax.experimental import pallas as pl
from jax.experimental.pallas import tpu as pltpu

ALPHA = 0.8
GAMMA = 2


def _ce_partial_kernel(logits_ref, tgt_ref, out_ref, *, n_classes, p_total, r_tile):
    """Accumulate per-pixel cross-entropy into the resident (1, r_tile, 128) output block."""
    j = pl.program_id(1)

    @pl.when(j == 0)
    def _():
        out_ref[...] = jnp.zeros_like(out_ref)

    t = tgt_ref[0]                                           # (r_tile, 128) int32

    # Fully dense per-class slabs (slicing the untiled class axis is free).
    xs = [logits_ref[0, c].astype(jnp.float32) for c in range(n_classes)]

    # max over classes (unrolled, plain VPU elementwise)
    m = xs[0]
    for xc in xs[1:]:
        m = jnp.maximum(m, xc)

    # sum of exp + gather of the target-class logit (unrolled, dense)
    s = jnp.zeros_like(m)
    picked = jnp.zeros_like(m)
    for c, xc in enumerate(xs):
        s = s + jnp.exp(xc - m)
        # NOTE: out-of-range target values silently select 0 (documented divergence
        # from nn.CrossEntropyLoss, which would error).
        picked = jnp.where(t == c, xc, picked)

    ce = (m + jnp.log(s)) - picked                           # (r_tile, 128)

    # Mask pixels beyond the true image size (pixel padding and/or grid tail block).
    row = jax.lax.broadcasted_iota(jnp.int32, ce.shape, 0)
    lane = jax.lax.broadcasted_iota(jnp.int32, ce.shape, 1)
    pix = (j * r_tile + row) * 128 + lane
    ce = jnp.where(pix < p_total, ce, 0.0)

    out_ref[0] += ce


def focal_loss(inputs_nchw, targets_nhw, alpha=ALPHA, gamma=GAMMA, *, row_tile=512):
    """inputs_nchw: (N, C, H, W) float logits; targets_nhw: (N, H, W) int class ids."""
    N, C, H, W = inputs_nchw.shape
    P = H * W                                   # pixels per image; mean is over N * P

    logits = inputs_nchw.reshape(N, C, P)
    targets = targets_nhw.astype(jnp.int32).reshape(N, P)

    # Lay pixels out dense on (sublane, lane).  For the common P % 128 == 0 case this
    # is a pure metadata reshape (no HBM traffic); otherwise pad (rare, one extra copy).
    if P % 128 != 0:
        pad = (-P) % 128
        logits = jnp.pad(logits, ((0, 0), (0, 0), (0, pad)))
        targets = jnp.pad(targets, ((0, 0), (0, pad)))
    R = logits.shape[-1] // 128
    logits = logits.reshape(N, C, R, 128)
    targets = targets.reshape(N, R, 128)

    # Pixel tile: row_tile rows of 128 pixels (row_tile must be a multiple of 8).
    r_tile = R if R <= row_tile else row_tile
    num_tiles = pl.cdiv(R, r_tile)

    kernel = functools.partial(
        _ce_partial_kernel, n_classes=C, p_total=P, r_tile=r_tile
    )

    cost = pl.CostEstimate(
        flops=int(6 * N * P * C),
        transcendentals=int(N * P * (C + 1)),
        bytes_accessed=int(N * P * C * 4 + N * P * 4 + N * r_tile * 128 * 4),
    )

    partial = pl.pallas_call(
        kernel,
        out_shape=jax.ShapeDtypeStruct((N, r_tile, 128), jnp.float32),
        grid_spec=pltpu.PrefetchScalarGridSpec(
            num_scalar_prefetch=0,
            grid=(N, num_tiles),
            in_specs=[
                pl.BlockSpec((1, C, r_tile, 128), lambda n, j: (n, 0, j, 0)),
                pl.BlockSpec((1, r_tile, 128), lambda n, j: (n, j, 0)),
            ],
            out_specs=pl.BlockSpec((1, r_tile, 128), lambda n, j: (n, 0, 0)),
        ),
        compiler_params=pltpu.CompilerParams(
            dimension_semantics=("parallel", "arbitrary"),
        ),
        cost_estimate=cost,
    )(logits, targets)

    # Tiny scalar epilogue (mean reduction + focal transform) in plain JAX.
    bce = jnp.sum(partial) / jnp.float32(N * P)
    bce_exp = jnp.exp(-bce)
    return alpha * (1.0 - bce_exp) ** gamma * bce


def _focal_loss_ref(inputs_nchw, targets_nhw, alpha=ALPHA, gamma=GAMMA):
    # pure-JAX reference for sanity checking
    N, C, H, W = inputs_nchw.shape
    x = jnp.transpose(inputs_nchw, (0, 2, 3, 1)).reshape(-1, C).astype(jnp.float32)
    t = targets_nhw.reshape(-1)
    lse = jax.scipy.special.logsumexp(x, axis=-1)
    picked = jnp.take_along_axis(x, t[:, None], axis=-1)[:, 0]
    bce = jnp.mean(lse - picked)
    bce_exp = jnp.exp(-bce)
    return alpha * (1.0 - bce_exp) ** gamma * bce


if __name__ == "__main__":
    key = jax.random.PRNGKey(0)
    k1, k2 = jax.random.split(key)

    N, C, H, W = 2, 4, 16, 16
    inputs = jax.random.normal(k1, (N, C, H, W), dtype=jnp.float32)
    targets = jax.random.randint(k2, (N, H, W), 0, C, dtype=jnp.int32)

    loss = focal_loss(inputs, targets)
    jax.block_until_ready(loss)

    ref = _focal_loss_ref(inputs, targets)
    assert jnp.allclose(loss, ref, rtol=1e-5, atol=1e-5), (loss, ref)

    print("KERNEL_OK")
</pallas_src>

<mosaic_0001>
module attributes {stable_mosaic.version = 11 : i64} {
  func.func @_ce_partial_kernel(%arg0: i32, %arg1: i32, %arg2: memref<1x4x2x128xf32, #tpu.memory_space<vmem>>, %arg3: memref<1x2x128xi32, #tpu.memory_space<vmem>>, %arg4: memref<1x2x128xf32, #tpu.memory_space<vmem>>) attributes {dimension_semantics = [#tpu.dimension_semantics<parallel>, #tpu.dimension_semantics<arbitrary>], iteration_bounds = array<i64: 2, 1>, scalar_prefetch = 0 : i64, scratch_operands = 0 : i64, tpu.core_type = #tpu.core_type<tc>, window_params = [{transform_indices = @transform_0, window_bounds = array<i64: 1, 4, 2, 128>}, {transform_indices = @transform_1, window_bounds = array<i64: 1, 2, 128>}, {transform_indices = @transform_2, window_bounds = array<i64: 1, 2, 128>}]} {
    %c0_i32 = arith.constant 0 : i32
    %0 = arith.cmpi eq, %arg1, %c0_i32 : i32
    %1 = arith.extui %0 : i1 to i32
    %c0_i32_0 = arith.constant 0 : i32
    %2 = arith.cmpi ne, %1, %c0_i32_0 : i32
    scf.if %2 {
      %cst_26 = arith.constant 0.000000e+00 : f32
      %63 = vector.broadcast %cst_26 : f32 to vector<1x2x128xf32>
      %c0_27 = arith.constant 0 : index
      %c0_28 = arith.constant 0 : index
      %c0_29 = arith.constant 0 : index
      %64 = vector.load %arg4[%c0_27, %c0_28, %c0_29] : memref<1x2x128xf32, #tpu.memory_space<vmem>>, vector<1x2x128xf32>
      tpu.vector_store %arg4[%c0_27, %c0_28, %c0_29], %63 {strides = array<i32>} : memref<1x2x128xf32, #tpu.memory_space<vmem>>, vector<1x2x128xf32>,
    } else {
    }
    %c0 = arith.constant 0 : index
    %c0_1 = arith.constant 0 : index
    %c0_2 = arith.constant 0 : index
    %3 = vector.load %arg3[%c0, %c0_1, %c0_2] : memref<1x2x128xi32, #tpu.memory_space<vmem>>, vector<1x2x128xi32>
    %4 = vector.shape_cast %3 : vector<1x2x128xi32> to vector<2x128xi32>
    %c0_3 = arith.constant 0 : index
    %c0_4 = arith.constant 0 : index
    %c0_5 = arith.constant 0 : index
    %c0_6 = arith.constant 0 : index
    %5 = vector.load %arg2[%c0_3, %c0_4, %c0_5, %c0_6] : memref<1x4x2x128xf32, #tpu.memory_space<vmem>>, vector<1x1x2x128xf32>
    %6 = vector.shape_cast %5 : vector<1x1x2x128xf32> to vector<2x128xf32>
    %c0_7 = arith.constant 0 : index
    %c1 = arith.constant 1 : index
    %c0_8 = arith.constant 0 : index
    %c0_9 = arith.constant 0 : index
    %7 = vector.load %arg2[%c0_7, %c1, %c0_8, %c0_9] : memref<1x4x2x128xf32, #tpu.memory_space<vmem>>, vector<1x1x2x128xf32>
    %8 = vector.shape_cast %7 : vector<1x1x2x128xf32> to vector<2x128xf32>
    %c0_10 = arith.constant 0 : index
    %c2 = arith.constant 2 : index
    %c0_11 = arith.constant 0 : index
    %c0_12 = arith.constant 0 : index
    %9 = vector.load %arg2[%c0_10, %c2, %c0_11, %c0_12] : memref<1x4x2x128xf32, #tpu.memory_space<vmem>>, vector<1x1x2x128xf32>
    %10 = vector.shape_cast %9 : vector<1x1x2x128xf32> to vector<2x128xf32>
    %c0_13 = arith.constant 0 : index
    %c3 = arith.constant 3 : index
    %c0_14 = arith.constant 0 : index
    %c0_15 = arith.constant 0 : index
    %11 = vector.load %arg2[%c0_13, %c3, %c0_14, %c0_15] : memref<1x4x2x128xf32, #tpu.memory_space<vmem>>, vector<1x1x2x128xf32>
    %12 = vector.shape_cast %11 : vector<1x1x2x128xf32> to vector<2x128xf32>
    %13 = arith.maximumf %6, %8 : vector<2x128xf32>
    %14 = arith.maximumf %13, %10 : vector<2x128xf32>
    %15 = arith.maximumf %14, %12 : vector<2x128xf32>
    %cst = arith.constant 0.000000e+00 : f32
    %16 = vector.broadcast %cst : f32 to vector<2x128xf32>
    %cst_16 = arith.constant 0.000000e+00 : f32
    %17 = vector.broadcast %cst_16 : f32 to vector<2x128xf32>
    %18 = arith.subf %6, %15 : vector<2x128xf32>
    %19 = math.exp %18 : vector<2x128xf32>
    %20 = arith.addf %16, %19 : vector<2x128xf32>
    %c0_i32_17 = arith.constant 0 : i32
    %21 = vector.broadcast %c0_i32_17 : i32 to vector<2x128xi32>
    %22 = arith.cmpi eq, %4, %21 : vector<2x128xi32>
    %23 = arith.select %22, %6, %17 : vector<2x128xi1>, vector<2x128xf32>
    %24 = arith.subf %8, %15 : vector<2x128xf32>
    %25 = math.exp %24 : vector<2x128xf32>
    %26 = arith.addf %20, %25 : vector<2x128xf32>
    %c1_i32 = arith.constant 1 : i32
    %27 = vector.broadcast %c1_i32 : i32 to vector<2x128xi32>
    %28 = arith.cmpi eq, %4, %27 : vector<2x128xi32>
    %29 = arith.select %28, %8, %23 : vector<2x128xi1>, vector<2x128xf32>
    %30 = arith.subf %10, %15 : vector<2x128xf32>
    %31 = math.exp %30 : vector<2x128xf32>
    %32 = arith.addf %26, %31 : vector<2x128xf32>
    %c2_i32 = arith.constant 2 : i32
    %33 = vector.broadcast %c2_i32 : i32 to vector<2x128xi32>
    %34 = arith.cmpi eq, %4, %33 : vector<2x128xi32>
    %35 = arith.select %34, %10, %29 : vector<2x128xi1>, vector<2x128xf32>
    %36 = arith.subf %12, %15 : vector<2x128xf32>
    %37 = math.exp %36 : vector<2x128xf32>
    %38 = arith.addf %32, %37 : vector<2x128xf32>
    %c3_i32 = arith.constant 3 : i32
    %39 = vector.broadcast %c3_i32 : i32 to vector<2x128xi32>
    %40 = arith.cmpi eq, %4, %39 : vector<2x128xi32>
    %41 = arith.select %40, %12, %35 : vector<2x128xi1>, vector<2x128xf32>
    %42 = math.log %38 : vector<2x128xf32>
    %43 = arith.addf %15, %42 : vector<2x128xf32>
    %44 = arith.subf %43, %41 : vector<2x128xf32>
    %45 = tpu.iota {dimensions = array<i32: 0>} : vector<2x128xi32>
    %46 = tpu.iota {dimensions = array<i32: 1>} : vector<2x128xi32>
    %c2_i32_18 = arith.constant 2 : i32
    %47 = arith.muli %arg1, %c2_i32_18 : i32
    %48 = vector.broadcast %47 : i32 to vector<2x128xi32>
    %49 = arith.addi %48, %45 : vector<2x128xi32>
    %c128_i32 = arith.constant 128 : i32
    %50 = vector.broadcast %c128_i32 : i32 to vector<2x128xi32>
    %51 = arith.muli %49, %50 : vector<2x128xi32>
    %52 = arith.addi %51, %46 : vector<2x128xi32>
    %c256_i32 = arith.constant 256 : i32
    %53 = vector.broadcast %c256_i32 : i32 to vector<2x128xi32>
    %54 = arith.cmpi slt, %52, %53 : vector<2x128xi32>
    %cst_19 = arith.constant 0.000000e+00 : f32
    %55 = vector.broadcast %cst_19 : f32 to vector<2x128xf32>
    %56 = arith.select %54, %44, %55 : vector<2x128xi1>, vector<2x128xf32>
    %c0_20 = arith.constant 0 : index
    %c0_21 = arith.constant 0 : index
    %c0_22 = arith.constant 0 : index
    %57 = vector.load %arg4[%c0_20, %c0_21, %c0_22] : memref<1x2x128xf32, #tpu.memory_space<vmem>>, vector<1x2x128xf32>
    %58 = vector.shape_cast %57 : vector<1x2x128xf32> to vector<2x128xf32>
    %59 = arith.addf %58, %56 : vector<2x128xf32>
    %c0_23 = arith.constant 0 : index
    %c0_24 = arith.constant 0 : index
    %c0_25 = arith.constant 0 : index
    %60 = vector.load %arg4[%c0_23, %c0_24, %c0_25] : memref<1x2x128xf32, #tpu.memory_space<vmem>>, vector<1x2x128xf32>
    %61 = vector.shape_cast %60 : vector<1x2x128xf32> to vector<2x128xf32>
    %62 = vector.shape_cast %59 : vector<2x128xf32> to vector<1x2x128xf32>
    tpu.vector_store %arg4[%c0_23, %c0_24, %c0_25], %62 {strides = array<i32>} : memref<1x2x128xf32, #tpu.memory_space<vmem>>, vector<1x2x128xf32>,
    return
  }
  func.func @transform_0(%arg0: i32, %arg1: i32) -> (i32, i32, i32, i32) {
    %c0_i32 = arith.constant 0 : i32
    %c0_i32_0 = arith.constant 0 : i32
    %c0_i32_1 = arith.constant 0 : i32
    return %arg0, %c0_i32, %arg1, %c0_i32_0 : i32, i32, i32, i32
  }
  func.func @transform_1(%arg0: i32, %arg1: i32) -> (i32, i32, i32) {
    %c0_i32 = arith.constant 0 : i32
    %c0_i32_0 = arith.constant 0 : i32
    return %arg0, %arg1, %c0_i32 : i32, i32, i32
  }
  func.func @transform_2(%arg0: i32, %arg1: i32) -> (i32, i32, i32) {
    %c0_i32 = arith.constant 0 : i32
    %c0_i32_0 = arith.constant 0 : i32
    %c0_i32_1 = arith.constant 0 : i32
    return %arg0, %c0_i32, %c0_i32_0 : i32, i32, i32
  }
}

</mosaic_0001>

<bundles_post_ra>
// kernel: tpu_custom_call.1
= control target key start
LH: loop header
LB: loop body
LE: loop exit
PB: predicated region body
PF: predicated region fallthrough
CT: control target
= control target key end

     0   :  { %7 = vsyncpa [#allocation3], 0  ;;  %s810_s0 = inlined_call_operand.hbm [shape: f32[2,4,2,128], index: 0, kind: input, shape index: {}]   ;;  %s811_s1 = inlined_call_operand.hbm [shape: s32[2,2,128], index: 1, kind: input, shape index: {}]   ;;  %s812_s2 = inlined_call_operand.hbm [shape: f32[2,2,128], index: 2, kind: output, shape index: {}]  }
   0x1   :  { %9 = vsyncpa [#allocation3 + $0x1], 0 }
   0x2   :  { %10 = vsyncpa [#allocation6], 0 }
   0x3   :  { %12 = vsyncpa [#allocation6 + $0x1], 0 }
   0x4   :  { %13 = vsyncpa [#allocation4], 0 }
   0x5   :  { %15 = vsyncpa [#allocation4 + $0x1], 0  ;;  %s666_s9 = smov 0   ;;  %s668_s10 = smov 0  }
   0x6   :  { %s670_s11 = smov 0   ;;  %s672_s12 = smov 0  }
   0x7   :  { %s674_s13 = smov 0   ;;  %s676_s14 = smov 0  }
   0x8 LB: > { %s399_s15 = sadd.s32 4294967295, %s646_s14   ;;  %s400_s16 = sadd.s32 4294967294, %s646_s14   ;;  %s646_s14 = sphi %s676_s14, %s21_s14   ;;  %s642_s13 = sphi %s674_s13, %s822_s13   ;;  %s638_s12 = sphi %s672_s12, %s821_s12   ;;  %s634_s11 = sphi %s670_s11, %s820_s11   ;;  %s630_s10 = sphi %s668_s10, %s819_s10   ;;  %s626_s9 = sphi %s666_s9, %s818_s9  }
   0x9   : > { %s33_s17 = sadd.s32 1, %s642_s13  ;;  %s42_s18 = sadd.s32 1, %s634_s11 }
   0xa   : > { %p35_p0 = scmp.ge.s32.totalorder %s33_s17, 2  ;;  %p49_p1 = scmp.ne.s32.totalorder %s634_s11, %s630_s10 }
   0xb   : > { %p50_p2 = scmp.eq.s32.totalorder %s646_s14, 0  ;;  %p55_p3 = scmp.ne.s32.totalorder %s630_s10, %s626_s9 }
   0xc   : > { %s824_s17 = smov (%p35_p0, %s33_s17), 0  ;;  %p56_p5 = scmp.eq.s32.totalorder %s399_s15, 0 }
   0xd   : > { %p707_p4 = por %p50_p2, %p49_p1  ;;  %s37_s20 = ssub.s32 %s642_s13, %s824_s17 }
   0xe   : > { %p107_p6 = scmp.eq.s32.totalorder %s399_s15, 1  ;;  %p40_p7 = scmp.eq.s32.totalorder %s37_s20, 0 }
   0xf   : > { %p713_p8 = por %p56_p5, %p55_p3  ;;  %p113_p10 = scmp.eq.s32.totalorder %s400_s16, 1 }
  0x10   : > { %p717_p9 = por %p107_p6, %p49_p1  ;;  %p402_p12 = scmp.ge.s32.totalorder %s646_s14, 2 }
  0x11   : > { %s722_s23 = scalar_select %p40_p7, %s634_s11, %s42_s18  }
  0x12   : > { %p724_p11 = por %p113_p10, %p55_p3  ;;  %p437_p13 = scmp.lt.s32.totalorder %s646_s14, 2 }
  0x13   : > { %s133_s25 = sand.u32 1, %s634_s11   ;;  %s419_s27 = sshll.u32 %s642_s13, 3 }
  0x14   : > { %s403_s26 = sshll.u32 %s133_s25, 3  ;;  %s143_s30 = scalar_lea.hbm %s810_s0, %s419_s27 }
  0x15   : > { %s137_s3 = scalar_lea.vmem [#allocation2], %s403_s26  ;;  %s144_s5 = sshll.u32 %s143_s30, 4  ;;  %s145_s5 = int_to_ptr.hbm [resolvable:$true] %s144_s5 }
  0x16   : > { %s146_s4 = sshll.u32 %s137_s3, 4  ;;  %p737_p0 = pnand %p437_p13, %p707_p4  ;;  %s147_s4 = int_to_ptr.vmem [resolvable:$true] %s146_s4 }
  0x17   : > { %p408_p1 = scmp.ge.s32.totalorder %s646_s14, 1  ;;  %s134_s7 = scalar_lea.sflag [#allocation3], %s133_s25 }
  0x18   : > { %s648_s8 = smov 32   ;;  %s649_s15 = smov 2  }
  0x19   : > { %429 = dma.hbm_to_vmem [thread:$0]  (!%p737_p0), %s145_s5, 128, %s147_s4, %s134_s7, %s648_s8, %s648_s8, %s649_s15  }
  0x1a   : > { %p174_p2 = scmp.lt.s32.totalorder %s646_s14, 3  ;;  %s406_s16 = sshll.u32 %s133_s25, 1 }
  0x1b   : > { %s407_s18 = sshll.u32 %s642_s13, 1  ;;  %s160_s27 = scalar_lea.vmem [#allocation5], %s406_s16 }
  0x1c   : > { %p175_p3 = pnand %p408_p1, %p174_p2  ;;  %s165_s19 = scalar_lea.hbm %s811_s1, %s407_s18 }
  0x1d   : > { %s169_s28 = sshll.u32 %s160_s27, 4  ;;  %s167_s29 = sshll.u32 %s165_s19, 4  ;;  %s170_s28 = int_to_ptr.vmem [resolvable:$true] %s169_s28  ;;  %s168_s29 = int_to_ptr.hbm [resolvable:$true] %s167_s29 }
  0x1e   : > { %s157_s30 = scalar_lea.sflag [#allocation6], %s133_s25  ;;  %178 = sbr.rel (%p175_p3) target bundleno = 84 (0x54), region = 28 }
  0x1f   : > { %432 = dma.hbm_to_vmem [thread:$0]  (!%p737_p0), %s168_s29, 32, %s170_s28, %s157_s30  }
  0x20   : > { %s752_s3 = sand.u32 (!%p175_p3), 1, %s630_s10  }
  0x21   : > { %s409_s4 = sshll.u32 (!%p175_p3), %s752_s3, 3  ;;  %s181_s5 = scalar_lea.sflag (!%p175_p3), [#allocation3], %s752_s3 }
  0x22   : > { %s184_s7 = scalar_lea.vmem (!%p175_p3), [#allocation2], %s409_s4 }
  0x23   : > { %613 = dma.done.wait (%p713_p8), %s181_s5, 128  }
  0x24   : > { %615 = vsyncadd (%p713_p8), %s181_s5, 4294967168  ;;  %s410_s25 = sshll.u32 %s752_s3, 1  ;;  %s191_s6 = scalar_lea.sflag [#allocation6], %s752_s3 }
  0x25   : > { %s194_s8 = scalar_lea.vmem [#allocation5], %s410_s25 }
  0x26   : > { %617 = dma.done.wait (%p713_p8), %s191_s6, 32  }
  0x27   : > { %619 = vsyncadd (%p713_p8), %s191_s6, 4294967264  ;;  %s766_s15 = scalar_lea.vmem [#allocation7], %s410_s25  ;;  %v650_v0 = vmov 0.0   ;;  %v227_v1 = vld [vmem:[%s184_s7] sm:$0x3]  ;;  %v265_v21 = vlaneseq  ;;  %s416_s21 = sshll.u32 %s638_s12, 1 }
  0x28   : > { %225 = vst [vmem:[%s766_s15] sm:$0x3] %v650_v0  ;;  %v412_v2 = vld [vmem:[%s184_s7 + $0x2] sm:$0x3]  ;;  %v413_v3 = vld [vmem:[%s184_s7 + $0x4] sm:$0x3]  ;;  %s290_s20 = scalar_lea.hbm %s812_s2, %s416_s21  ;;  %s292_s26 = sshll.u32 %s766_s15, 4  ;;  %s293_s26 = int_to_ptr.vmem [resolvable:$true] %s292_s26 }
  0x29   : > { %v234_v4 = vmax.f32 %v227_v1, %v412_v2  ;;  %v414_v5 = vld [vmem:[%s184_s7 + $0x6] sm:$0x3]  ;;  %v226_v18 = vld [vmem:[%s194_s8] sm:$0x3]  ;;  %v266_v25 = vshrl.u32 %v265_v21, 7  ;;  %v268_v28 = vand.u32 127, %v265_v21 }
  0x2a   : > { %vm241_vm0 = vcmp.eq.s32.totalorder %v226_v18, 0  ;;  %vm247_vm1 = vcmp.eq.s32.totalorder %v226_v18, 1  ;;  %vm253_vm2 = vcmp.eq.s32.totalorder %v226_v18, 2  ;;  %vm259_vm3 = vcmp.eq.s32.totalorder %v226_v18, 3  ;;  %s294_s19 = sshll.u32 %s290_s20, 4  ;;  %s280_s12 = scalar_lea.sflag [#allocation4], %s752_s3  ;;  %s295_s19 = int_to_ptr.hbm [resolvable:$true] %s294_s19 }
  0x2b   : > { %v235_v6 = vmax.f32 %v234_v4, %v413_v3  ;;  %v242_v26 = vsel %vm241_vm0, %v227_v1, 0.0  ;;  %v272_v29 = vmul.u32 128, %v266_v25  ;;  %s574_s27 = sshra.s32 %s295_s19, 4  ;;  %s580_s4 = scalar_lea.hbm %s812_s2, 4  ;;  %s575_s27 = int_to_ptr.hbm [resolvable:$true] %s574_s27 }
  0x2c   : > { %v248_v27 = vsel %vm247_vm1, %v412_v2, %v242_v26  ;;  %s576_s28 = scalar_lea.hbm %s575_s27, 2  ;;  %p581_p7 = scmp.lt.s32.totalorder %s575_s27, %s812_s2 }
  0x2d   : > { %v236_v7 = vmax.f32 %v235_v6, %v414_v5  ;;  %v254_v30 = vsel %vm253_vm2, %v413_v3, %v248_v27  ;;  %v273_v32 = vadd.s32 %v272_v29, %v268_v28  ;;  %p577_p4 = scmp.ne.s32.totalorder %s575_s27, %s576_s28  ;;  %p582_p8 = scmp.lt.s32.totalorder %s580_s4, %s576_s28 }
  0x2e   : > { %v260_v34 = vsel %vm259_vm3, %v414_v5, %v254_v30 }
  0x2f   : > { %v237_v8 = vsub.f32 %v227_v1, %v236_v7  ;;  %v243_v9 = vsub.f32 %v412_v2, %v236_v7  ;;  %v249_v10 = vsub.f32 %v413_v3, %v236_v7  ;;  %v255_v11 = vsub.f32 %v414_v5, %v236_v7  ;;  %v276_v37 = vld [vmem:[%s766_s15] sm:$0x3]  ;;  %p578_p5 = pnand %p577_p4, %p717_p9  ;;  %p583_p10 = por %p582_p8, %p581_p7 }
  0x30   : > { %vm274_vm4 = vcmp.lt.s32.totalorder %v273_v32, 256 }
  0x31   : > { %v238_v12 = vmul.f32 1.442695, %v237_v8  ;;  %v244_v13 = vmul.f32 1.442695, %v243_v9  ;;  %v250_v14 = vmul.f32 1.442695, %v249_v10  ;;  %p579_p6 = pneg %p578_p5 }
  0x32   : > { %v256_v15 = vmul.f32 1.442695, %v255_v11 }
  0x33   : > { %490 = vpow2.f32 %v238_v12  ;;  %p584_p13 = pnand %p583_p10, %p579_p6 }
  0x34   : > { %492 = vpow2.f32 %v244_v13 }
  0x35   : > { %494 = vpow2.f32 %v250_v14 }
  0x36   : > { %496 = vpow2.f32 %v256_v15 }
  0x39   : > { %v491_v16 = vpop.eup %490 }
  0x3a   : > { %v493_v17 = vpop.eup %492 }
  0x3b   : > { %v495_v19 = vpop.eup %494  ;;  %v246_v20 = vadd.f32 %v493_v17, %v491_v16 }
  0x3c   : > { %v497_v22 = vpop.eup %496 }
  0x3d   : > { %v252_v23 = vadd.f32 %v495_v19, %v246_v20 }
  0x3f   : > { %v258_v24 = vadd.f32 %v497_v22, %v252_v23 }
  0x41   : > { %498 = vlog2.f32 %v258_v24 }
  0x47   : > { %v499_v31 = vpop.eup %498 }
  0x48   : > { %v262_v33 = vmul.f32 0.6931472, %v499_v31 }
  0x4a   : > { %v263_v35 = vadd.f32 %v262_v33, %v236_v7 }
  0x4c   : > { %v264_v36 = vsub.f32 %v263_v35, %v260_v34 }
  0x4e   : > { %v275_v38 = vsel %vm274_vm4, %v264_v36, 0.0 }
  0x4f   : > { %v277_v39 = vadd.f32 %v276_v37, %v275_v38 }
  0x51   : > { %278 = vst [vmem:[%s766_s15] sm:$0x3] %v277_v39 }
  0x52   : > { %587 = shalt.err (!%p584_p13)
}
  0x53   : > { %424 = dma.vmem_to_hbm [thread:$0]  (%p717_p9), %s293_s26, 32, %s295_s19, %s280_s12  }
  0x54 PF: > { %s306_s3 = sand.u32 1, %s626_s9   ;;  %p434_p0 = pnand %p402_p12, %p724_p11 }
  0x55   : > { %s307_s25 = scalar_lea.sflag [#allocation4], %s306_s3 }
  0x56   : > { %p435_p1 = pneg %p434_p0 }
  0x58   : > { %621 = dma.done.wait (%p435_p1), %s307_s25, 32  }
  0x59   : > { %623 = vsyncadd (%p435_p1), %s307_s25, 4294967264  ;;  %s21_s14 = sadd.s32 1, %s646_s14   ;;  %s818_s9 = smov %s630_s10 }
  0x5a   : > { %p18_p2 = scmp.ge.s32.totalorder %s21_s14, 4   ;;  %s819_s10 = smov %s634_s11 }
  0x5b   : > { %s820_s11 = smov %s722_s23  ;;  %s821_s12 = smov %s642_s13 }
  0x5c   : > { %s822_s13 = smov %s824_s17  ;;  %20 = sbr.rel (!%p18_p2) target bundleno = 8 (0x8), region = 93 }
  0x61   :  { %313 = vsyncpa [#allocation3], 1 }
  0x62   :  { %315 = vsyncpa [#allocation3 + $0x1], 1 }
  0x63   :  { %316 = vsyncpa [#allocation6], 1 }
  0x64   :  { %318 = vsyncpa [#allocation6 + $0x1], 1 }
  0x65   :  { %319 = vsyncpa [#allocation4], 1 }
  0x66   :  { %321 = vsyncpa [#allocation4 + $0x1], 1 }

</bundles_post_ra>
